<compile_context>
chip_gen: v6e
topology: v6e:2x2x1
jax: 0.10.0
libtpu: 0.0.40
codegen_flags: <defaults>
</compile_context>

<pallas_src>
import math

import jax
import jax.numpy as jnp
from jax.experimental import pallas as pl
from jax.experimental.pallas import tpu as pltpu

_LANE = 128
_TRAILING_TILE_CAP = 512        # 512-wide lane tiles sit near HBM roofline on v6e
_TARGET_BLOCK_BYTES = 1 << 20   # ~1 MiB input block amortizes ~0.35us/step overhead
_MAX_LEAD_ROWS = 1024


# --------------------------------------------------------------------------
# kernels
# --------------------------------------------------------------------------
def _transpose_trailing_kernel(x_ref, o_ref):
    # (lb, TA, TB) -> (lb, TB, TA): identity on the leading (batched) axis plus
    # a swap of the trailing two axes -- the transpose form Mosaic lowers
    # natively to XLU vxpose.  One batched op (no per-row Python loop) so the
    # whole block is scheduled together and live ranges stay bounded.
    o_ref[...] = jnp.swapaxes(x_ref[...], 1, 2)


def _copy_kernel(x_ref, o_ref):
    o_ref[...] = x_ref[...]


# --------------------------------------------------------------------------
# helpers
# --------------------------------------------------------------------------
def _merge_runs(shape, dims):
    """Merge input axes that remain adjacent & in order in the output."""
    runs = []
    for d in dims:
        if runs and d == runs[-1][-1] + 1:
            runs[-1].append(d)
        else:
            runs.append([d])
    runs_in_input_order = sorted(runs, key=lambda r: r[0])
    red_in_shape = tuple(
        math.prod(shape[a] for a in r) for r in runs_in_input_order)
    pos = {tuple(r): i for i, r in enumerate(runs_in_input_order)}
    red_perm = tuple(pos[tuple(r)] for r in runs)
    return red_in_shape, red_perm


def _tile_trailing_dim(full, cap):
    """Block size for a trailing dim: the full extent if small enough,
    otherwise a multiple of 128 (legal both as a lane dim and -- after the
    in-kernel transpose -- as a sublane dim of the output block)."""
    if full <= cap:
        return int(full)
    return int(max(_LANE, (cap // _LANE) * _LANE))


def _vmem_limit_bytes(block_bytes):
    # in + out blocks, double-buffered (~4x block_bytes), plus headroom for
    # Mosaic relayout scratch; clamp to a value valid on every generation
    # (v5e default scoped 16 MiB, v7x 64 MiB/TC physical).
    return int(min(max(8 * block_bytes, 16 << 20), 32 << 20))


# --------------------------------------------------------------------------
# path 1: leading axes untouched, trailing two axes swapped
# --------------------------------------------------------------------------
def _transpose_trailing(x3):
    """(L, A, B) -> (L, B, A), tiled over all three axes."""
    L, A, B = x3.shape
    itemsize = x3.dtype.itemsize
    TA = _tile_trailing_dim(A, _TRAILING_TILE_CAP)
    TB = _tile_trailing_dim(B, _TRAILING_TILE_CAP)
    slab = max(TA * TB * itemsize, 1)
    # Batch leading rows so each input block is ~1 MiB ...
    lb = max(1, min(L, _MAX_LEAD_ROWS, _TARGET_BLOCK_BYTES // slab))
    # ... but keep >= 2 total grid steps when possible so megacore (v7x: two
    # TensorCores) has independent tiles to shard.
    while lb > 1 and pl.cdiv(L, lb) * pl.cdiv(A, TA) * pl.cdiv(B, TB) < 2:
        lb //= 2
    block_bytes = lb * TA * TB * itemsize
    grid = (pl.cdiv(L, lb), pl.cdiv(A, TA), pl.cdiv(B, TB))

    # TODO(synk): when the new minor dim A is narrow (< 128, e.g. C=4 in
    # NCHW->NHWC) the stores are lane-masked; flattening the output block to a
    # lane-dense (lb, TB*A) slab would be faster but needs an in-kernel
    # relayout reshape, left out here to keep lowering risk-free.
    return pl.pallas_call(
        _transpose_trailing_kernel,
        out_shape=jax.ShapeDtypeStruct((L, B, A), x3.dtype),
        grid_spec=pltpu.PrefetchScalarGridSpec(
            num_scalar_prefetch=0,
            grid=grid,
            in_specs=[pl.BlockSpec((lb, TA, TB), lambda l, a, b: (l, a, b))],
            out_specs=pl.BlockSpec((lb, TB, TA), lambda l, a, b: (l, b, a)),
        ),
        compiler_params=pltpu.CompilerParams(
            dimension_semantics=("parallel", "parallel", "parallel"),
            vmem_limit_bytes=_vmem_limit_bytes(block_bytes)),
        cost_estimate=pl.CostEstimate(
            flops=0, transcendentals=0,
            bytes_accessed=2 * x3.size * itemsize),
    )(x3)


# --------------------------------------------------------------------------
# path 2: minor axis stays last, leading axes reordered (pure DMA relayout)
# --------------------------------------------------------------------------
def _reorder_keep_minor(x_red, red_perm):
    k = len(red_perm)
    S = x_red.shape
    T = tuple(S[red_perm[r]] for r in range(k))
    itemsize = x_red.dtype.itemsize
    TB = _tile_trailing_dim(S[-1], _TRAILING_TILE_CAP)
    grid = tuple(int(s) for s in S[:k - 1]) + (pl.cdiv(S[-1], TB),)
    blk = (1,) * (k - 1) + (TB,)
    p = red_perm

    def in_map(*g):
        return g

    def out_map(*g):
        return tuple(g[p[r]] for r in range(k - 1)) + (g[k - 1],)

    # TODO(synk): after full run-merging no leading axis can be batched with
    # the minor, so this fallback moves one minor-dim row per grid step and is
    # step-overhead bound for large leading extents.
    return pl.pallas_call(
        _copy_kernel,
        out_shape=jax.ShapeDtypeStruct(T, x_red.dtype),
        grid_spec=pltpu.PrefetchScalarGridSpec(
            num_scalar_prefetch=0,
            grid=grid,
            in_specs=[pl.BlockSpec(blk, in_map)],
            out_specs=pl.BlockSpec(blk, out_map),
        ),
        compiler_params=pltpu.CompilerParams(
            dimension_semantics=("parallel",) * len(grid),
            vmem_limit_bytes=_vmem_limit_bytes(TB * itemsize)),
        cost_estimate=pl.CostEstimate(
            flops=0, transcendentals=0,
            bytes_accessed=2 * x_red.size * itemsize),
    )(x_red)


# --------------------------------------------------------------------------
# public wrapper
# --------------------------------------------------------------------------
def permute(x, dims):
    nd = x.ndim
    dims = tuple(d % nd for d in dims)
    if sorted(dims) != list(range(nd)):
        raise ValueError(f"dims {dims} is not a permutation of {tuple(range(nd))}")
    out_shape = tuple(x.shape[d] for d in dims)

    if x.size == 0:
        return x.reshape(out_shape)          # degenerate: nothing to move

    red_in_shape, red_perm = _merge_runs(x.shape, dims)
    k = len(red_perm)

    # 1) Identity permutation: nothing moves -> return the input directly
    #    (no Pallas launch, no HBM traffic, no VMEM-OOM hazard).
    if red_perm == tuple(range(k)):
        return x

    # 2) Leading (merged) axes untouched, trailing two (merged) axes swapped.
    if red_perm == tuple(range(k - 2)) + (k - 1, k - 2):
        L = math.prod(red_in_shape[:-2])       # empty prod -> 1
        A, B = red_in_shape[-2], red_in_shape[-1]
        out3 = _transpose_trailing(x.reshape(L, A, B))   # reshapes = free views
        return out3.reshape(out_shape)

    # 3) Minor axis stays last, leading axes reordered.
    if red_perm[-1] == k - 1:
        out_red = _reorder_keep_minor(x.reshape(red_in_shape), red_perm)
        return out_red.reshape(out_shape)

    # 4) General case (minor axis moves and it is not a plain trailing swap):
    #    pass 1 brings the new minor axis to the end (trailing-swap kernel),
    #    pass 2 reorders the leading axes with the minor fixed (path 3).
    q = dims[-1]
    perm1 = tuple(d for d in range(nd) if d != q) + (q,)
    inv1 = {a: i for i, a in enumerate(perm1)}
    perm2 = tuple(inv1[d] for d in dims)
    return permute(permute(x, perm1), perm2)


class Permute:
    """Pallas-TPU equivalent of the PyTorch `Permute(*dims)` module."""

    def __init__(self, *dims):
        self.dims = dims

    def __call__(self, x):
        return permute(x, self.dims)


if __name__ == "__main__":
    key = jax.random.PRNGKey(0)
    x = jax.random.normal(key, (2, 4, 16, 16), jnp.float32)   # NCHW

    # Permute(0, 2, 3, 1): NCHW -> NHWC  (trailing-swap path)
    y = jax.block_until_ready(Permute(0, 2, 3, 1)(x))
    assert y.shape == (2, 16, 16, 4)
    assert bool(jnp.array_equal(y, jnp.transpose(x, (0, 2, 3, 1)))), "NCHW->NHWC mismatch"

    # Permute(0, 3, 1, 2): NHWC -> NCHW (round-trips back to x)
    z = jax.block_until_ready(Permute(0, 3, 1, 2)(y))
    assert bool(jnp.array_equal(z, x)), "NHWC->NCHW round-trip mismatch"

    # Plain 2-D transpose: Permute(1, 0)
    m = jax.random.normal(jax.random.PRNGKey(1), (8, 128), jnp.float32)
    mt = jax.block_until_ready(Permute(1, 0)(m))
    assert bool(jnp.array_equal(mt, m.T)), "2-D transpose mismatch"

    # Identity permutation: Permute(0, 1, 2, 3) -- no-op, no Pallas launch
    ident = jax.block_until_ready(Permute(0, 1, 2, 3)(x))
    assert bool(jnp.array_equal(ident, x)), "identity permute mismatch"

    # Leading-axis reorder with the minor untouched: Permute(1, 0, 2)
    w = jax.random.normal(jax.random.PRNGKey(2), (2, 4, 128), jnp.float32)
    wp = jax.block_until_ready(Permute(1, 0, 2)(w))
    assert bool(jnp.array_equal(wp, jnp.transpose(w, (1, 0, 2)))), "(1,0,2) mismatch"

    # Full reversal: Permute(2, 1, 0)  (two-pass general path)
    v = jax.random.normal(jax.random.PRNGKey(3), (4, 8, 16), jnp.float32)
    vp = jax.block_until_ready(Permute(2, 1, 0)(v))
    assert bool(jnp.array_equal(vp, jnp.transpose(v, (2, 1, 0)))), "(2,1,0) mismatch"

    print("KERNEL_OK")
</pallas_src>

<mosaic_0001>
module attributes {stable_mosaic.version = 11 : i64} {
  func.func @_transpose_trailing_kernel(%arg0: i32, %arg1: i32, %arg2: i32, %arg3: memref<1x4x256xf32, #tpu.memory_space<vmem>>, %arg4: memref<1x256x4xf32, #tpu.memory_space<vmem>>) attributes {dimension_semantics = [#tpu.dimension_semantics<parallel>, #tpu.dimension_semantics<parallel>, #tpu.dimension_semantics<parallel>], iteration_bounds = array<i64: 2, 1, 1>, scalar_prefetch = 0 : i64, scratch_operands = 0 : i64, tpu.core_type = #tpu.core_type<tc>, window_params = [{transform_indices = @transform_0, window_bounds = array<i64: 1, 4, 256>}, {transform_indices = @transform_1, window_bounds = array<i64: 1, 256, 4>}]} {
    %c0 = arith.constant 0 : index
    %c0_0 = arith.constant 0 : index
    %c0_1 = arith.constant 0 : index
    %0 = vector.load %arg3[%c0, %c0_0, %c0_1] : memref<1x4x256xf32, #tpu.memory_space<vmem>>, vector<1x4x256xf32>
    %1 = tpu.transpose %0, [0, 2, 1] : vector<1x4x256xf32> -> vector<1x256x4xf32>
    %c0_2 = arith.constant 0 : index
    %c0_3 = arith.constant 0 : index
    %c0_4 = arith.constant 0 : index
    %2 = vector.load %arg4[%c0_2, %c0_3, %c0_4] : memref<1x256x4xf32, #tpu.memory_space<vmem>>, vector<1x256x4xf32>
    tpu.vector_store %arg4[%c0_2, %c0_3, %c0_4], %1 {strides = array<i32>} : memref<1x256x4xf32, #tpu.memory_space<vmem>>, vector<1x256x4xf32>,
    return
  }
  func.func @transform_0(%arg0: i32, %arg1: i32, %arg2: i32) -> (i32, i32, i32) {
    %c0_i32 = arith.constant 0 : i32
    return %arg0, %arg1, %arg2 : i32, i32, i32
  }
  func.func @transform_1(%arg0: i32, %arg1: i32, %arg2: i32) -> (i32, i32, i32) {
    %c0_i32 = arith.constant 0 : i32
    return %arg0, %arg2, %arg1 : i32, i32, i32
  }
}

</mosaic_0001>

<bundles_post_ra>
// kernel: tpu_custom_call.1
= control target key start
LH: loop header
LB: loop body
LE: loop exit
PB: predicated region body
PF: predicated region fallthrough
CT: control target
= control target key end

     0   :  { %6 = vsyncpa [#allocation3], 0  ;;  %s722_s0 = inlined_call_operand.hbm [shape: f32[2,4,256], index: 0, kind: input, shape index: {}]   ;;  %s723_s1 = inlined_call_operand.vmem [shape: f32[2,256,4], index: 1, kind: output, shape index: {}]  }
   0x1   :  { %8 = vsyncpa [#allocation3 + $0x1], 0  ;;  %s556_s6 = smov 0   ;;  %s558_s7 = smov 0  }
   0x2   :  { %s560_s8 = smov 0   ;;  %s562_s9 = smov 0  }
   0x3   :  { %s564_s10 = smov 0   ;;  %s566_s11 = smov 0  }
   0x4 LB: > { %s393_s12 = sadd.s32 4294967295, %s543_s11   ;;  %s33_s13 = sadd.s32 1, %s539_s10  ;;  %s543_s11 = sphi %s566_s11, %s14_s11   ;;  %s539_s10 = sphi %s564_s10, %s731_s10   ;;  %s535_s9 = sphi %s562_s9, %s730_s9   ;;  %s531_s8 = sphi %s560_s8, %s729_s8   ;;  %s527_s7 = sphi %s558_s7, %s728_s7   ;;  %s523_s6 = sphi %s556_s6, %s727_s6  }
   0x5   : > { %p35_p0 = scmp.ge.s32.totalorder %s33_s13, 2  ;;  %s44_s14 = sadd.s32 1, %s531_s8 }
   0x6   : > { %p51_p1 = scmp.ne.s32.totalorder %s531_s8, %s527_s7  ;;  %p52_p2 = scmp.eq.s32.totalorder %s543_s11, 0 }
   0x7   : > { %s733_s13 = smov (%p35_p0, %s33_s13), 0  ;;  %p57_p4 = scmp.ne.s32.totalorder %s527_s7, %s523_s6 }
   0x8   : > { %p592_p3 = por %p52_p2, %p51_p1  ;;  %s37_s16 = ssub.s32 %s539_s10, %s733_s13 }
   0x9   : > { %p58_p5 = scmp.eq.s32.totalorder %s393_s12, 0  ;;  %p42_p6 = scmp.eq.s32.totalorder %s37_s16, 0 }
   0xa   : > { %p414_p8 = scmp.lt.s32.totalorder %s543_s11, 2  ;;  %s111_s19 = sand.u32 1, %s531_s8  }
   0xb   : > { %p599_p7 = por %p58_p5, %p57_p4  ;;  %s406_s20 = sshll.u32 %s539_s10, 7 }
   0xc   : > { %s605_s18 = scalar_select %p42_p6, %s531_s8, %s44_s14  }
   0xd   : > { %s397_s21 = sshll.u32 %s111_s19, 3  ;;  %s125_s24 = scalar_lea.hbm %s722_s0, %s406_s20 }
   0xe   : > { %s115_s25 = scalar_lea.vmem [#allocation2], %s397_s21  ;;  %p614_p9 = pnand %p414_p8, %p592_p3 }
   0xf   : > { %s127_s26 = sshll.u32 %s115_s25, 4  ;;  %p400_p10 = scmp.ge.s32.totalorder %s543_s11, 1  ;;  %s128_s26 = int_to_ptr.vmem [resolvable:$true] %s127_s26 }
  0x10   : > { %p132_p11 = scmp.lt.s32.totalorder %s543_s11, 3  ;;  %s112_s28 = scalar_lea.sflag [#allocation3], %s111_s19 }
  0x11   : > { %p467_p12 = pneg %p614_p9  ;;  %s478_s29 = scalar_lea.vmem %s128_s26, 128 }
  0x12   : > { %p479_p13 = scmp.ne.s32.totalorder %s128_s26, %s478_s29  ;;  %s545_s30 = smov [#allocation2]  }
  0x13   : > { %s483_s2 = sshll.u32 %s545_s30, 4  ;;  %s484_s2 = int_to_ptr.vmem [resolvable:$false] %s483_s2 }
  0x14   : > { %p481_p0 = pnand %p479_p13, %p467_p12  ;;  %s485_s3 = scalar_lea.vmem %s484_s2, 256 }
  0x15   : > { %p486_p2 = scmp.lt.s32.totalorder %s128_s26, %s484_s2  ;;  %p487_p3 = scmp.lt.s32.totalorder %s485_s3, %s478_s29 }
  0x16   : > { %p482_p1 = pneg %p481_p0 }
  0x17   : > { %p488_p4 = por %p487_p3, %p486_p2 }
  0x19   : > { %p489_p5 = pnand %p488_p4, %p482_p1 }
  0x1b   : > { %492 = shalt.err (!%p489_p5)
}
  0x1c   : > { %413 = dma.hbm_to_vmem [thread:$0]  (!%p614_p9), %s125_s24, 128, %s128_s26, %s112_s28  }
  0x1d   : > { %p133_p6 = pnand %p400_p10, %p132_p11 }
  0x1e   : > { %s138_s4 = sand.u32 (!%p133_p6), 1, %s527_s7  }
  0x1f   : > { %136 = sbr.rel (%p133_p6) target bundleno = 288 (0x120), region = 24  ;;  %s401_s5 = sshll.u32 (!%p133_p6), %s138_s4, 3 }
  0x20   : > { %s139_s6 = scalar_lea.sflag (!%p133_p6), [#allocation3], %s138_s4  ;;  %s142_s12 = scalar_lea.vmem (!%p133_p6), [#allocation2], %s401_s5 }
  0x24   : > { %518 = dma.done.wait (%p599_p7), %s139_s6, 128  }
  0x25   : > { %520 = vsyncadd (%p599_p7), %s139_s6, 4294967168  ;;  %v182_v0 = vld [vmem:[%s142_s12] sm:$0xff]  ;;  %p170_p8 = scmp.lt.s32.totalorder %s535_s9, 1  ;;  %vm250_vm0 = vcmask 31744  }
  0x26   : > { %186 = vxpose.xlu0.b32.start.end [1/1] (short) %v182_v0, 128  ;;  %v184_v1 = vcombine.high %v182_v0, %v182_v0 }
  0x27   : > { %s735_s9 = smov (!%p170_p8, %s535_s9), 1 }
  0x28   : > { %s407_s14 = sshll.u32 %s735_s9, 8 }
  0x29   : > { %s638_s19 = scalar_lea.vmem %s723_s1, %s407_s14 }
  0x63   : > { %218 = vxpose.xlu0.b32.start.end [1/1] (short) %v184_v1, 128 }
  0xa2   : > { %v202_v2 = vpop.trf.xlu0 }
  0xa3   : > { %251 = vst.msk [vmem:[%s638_s19] sm:$0xff] %vm250_vm0, %v202_v2 }
  0xa6   : > { %v203_v3 = vpop.trf.xlu0 }
  0xa7   : > { %252 = vst.msk [vmem:[%s638_s19 + $0x8] sm:$0xff] %vm250_vm0, %v203_v3 }
  0xaa   : > { %v204_v4 = vpop.trf.xlu0 }
  0xab   : > { %253 = vst.msk [vmem:[%s638_s19 + $0x10] sm:$0xff] %vm250_vm0, %v204_v4 }
  0xae   : > { %v205_v5 = vpop.trf.xlu0 }
  0xaf   : > { %254 = vst.msk [vmem:[%s638_s19 + $0x18] sm:$0xff] %vm250_vm0, %v205_v5 }
  0xb2   : > { %v206_v6 = vpop.trf.xlu0 }
  0xb3   : > { %255 = vst.msk [vmem:[%s638_s19 + $0x20] sm:$0xff] %vm250_vm0, %v206_v6 }
  0xb6   : > { %v207_v7 = vpop.trf.xlu0 }
  0xb7   : > { %256 = vst.msk [vmem:[%s638_s19 + $0x28] sm:$0xff] %vm250_vm0, %v207_v7 }
  0xba   : > { %v208_v8 = vpop.trf.xlu0 }
  0xbb   : > { %257 = vst.msk [vmem:[%s638_s19 + $0x30] sm:$0xff] %vm250_vm0, %v208_v8 }
  0xbe   : > { %v209_v9 = vpop.trf.xlu0 }
  0xbf   : > { %258 = vst.msk [vmem:[%s638_s19 + $0x38] sm:$0xff] %vm250_vm0, %v209_v9 }
  0xc2   : > { %v210_v10 = vpop.trf.xlu0 }
  0xc3   : > { %259 = vst.msk [vmem:[%s638_s19 + $0x40] sm:$0xff] %vm250_vm0, %v210_v10 }
  0xc6   : > { %v211_v11 = vpop.trf.xlu0 }
  0xc7   : > { %260 = vst.msk [vmem:[%s638_s19 + $0x48] sm:$0xff] %vm250_vm0, %v211_v11 }
  0xca   : > { %v212_v12 = vpop.trf.xlu0 }
  0xcb   : > { %261 = vst.msk [vmem:[%s638_s19 + $0x50] sm:$0xff] %vm250_vm0, %v212_v12 }
  0xce   : > { %v213_v13 = vpop.trf.xlu0 }
  0xcf   : > { %262 = vst.msk [vmem:[%s638_s19 + $0x58] sm:$0xff] %vm250_vm0, %v213_v13 }
  0xd2   : > { %v214_v14 = vpop.trf.xlu0 }
  0xd3   : > { %263 = vst.msk [vmem:[%s638_s19 + $0x60] sm:$0xff] %vm250_vm0, %v214_v14 }
  0xd6   : > { %v215_v15 = vpop.trf.xlu0 }
  0xd7   : > { %264 = vst.msk [vmem:[%s638_s19 + $0x68] sm:$0xff] %vm250_vm0, %v215_v15 }
  0xda   : > { %v216_v16 = vpop.trf.xlu0 }
  0xdb   : > { %265 = vst.msk [vmem:[%s638_s19 + $0x70] sm:$0xff] %vm250_vm0, %v216_v16 }
  0xde   : > { %v217_v17 = vpop.trf.xlu0 }
  0xdf   : > { %266 = vst.msk [vmem:[%s638_s19 + $0x78] sm:$0xff] %vm250_vm0, %v217_v17 }
  0xe2   : > { %v234_v18 = vpop.trf.xlu0 }
  0xe3   : > { %267 = vst.msk [vmem:[%s638_s19 + $0x80] sm:$0xff] %vm250_vm0, %v234_v18 }
  0xe6   : > { %v235_v19 = vpop.trf.xlu0 }
  0xe7   : > { %268 = vst.msk [vmem:[%s638_s19 + $0x88] sm:$0xff] %vm250_vm0, %v235_v19 }
  0xea   : > { %v236_v20 = vpop.trf.xlu0 }
  0xeb   : > { %269 = vst.msk [vmem:[%s638_s19 + $0x90] sm:$0xff] %vm250_vm0, %v236_v20 }
  0xee   : > { %v237_v21 = vpop.trf.xlu0 }
  0xef   : > { %270 = vst.msk [vmem:[%s638_s19 + $0x98] sm:$0xff] %vm250_vm0, %v237_v21 }
  0xf2   : > { %v238_v22 = vpop.trf.xlu0 }
  0xf3   : > { %271 = vst.msk [vmem:[%s638_s19 + $0xa0] sm:$0xff] %vm250_vm0, %v238_v22 }
  0xf6   : > { %v239_v23 = vpop.trf.xlu0 }
  0xf7   : > { %272 = vst.msk [vmem:[%s638_s19 + $0xa8] sm:$0xff] %vm250_vm0, %v239_v23 }
  0xfa   : > { %v240_v24 = vpop.trf.xlu0 }
  0xfb   : > { %273 = vst.msk [vmem:[%s638_s19 + $0xb0] sm:$0xff] %vm250_vm0, %v240_v24 }
  0xfe   : > { %v241_v25 = vpop.trf.xlu0 }
  0xff   : > { %274 = vst.msk [vmem:[%s638_s19 + $0xb8] sm:$0xff] %vm250_vm0, %v241_v25 }
 0x102   : > { %v242_v26 = vpop.trf.xlu0 }
 0x103   : > { %275 = vst.msk [vmem:[%s638_s19 + $0xc0] sm:$0xff] %vm250_vm0, %v242_v26 }
 0x106   : > { %v243_v27 = vpop.trf.xlu0 }
 0x107   : > { %276 = vst.msk [vmem:[%s638_s19 + $0xc8] sm:$0xff] %vm250_vm0, %v243_v27 }
 0x10a   : > { %v244_v28 = vpop.trf.xlu0 }
 0x10b   : > { %277 = vst.msk [vmem:[%s638_s19 + $0xd0] sm:$0xff] %vm250_vm0, %v244_v28 }
 0x10e   : > { %v245_v29 = vpop.trf.xlu0 }
 0x10f   : > { %278 = vst.msk [vmem:[%s638_s19 + $0xd8] sm:$0xff] %vm250_vm0, %v245_v29 }
 0x112   : > { %v246_v30 = vpop.trf.xlu0 }
 0x113   : > { %279 = vst.msk [vmem:[%s638_s19 + $0xe0] sm:$0xff] %vm250_vm0, %v246_v30 }
 0x116   : > { %v247_v31 = vpop.trf.xlu0 }
 0x117   : > { %280 = vst.msk [vmem:[%s638_s19 + $0xe8] sm:$0xff] %vm250_vm0, %v247_v31 }
 0x11a   : > { %v248_v32 = vpop.trf.xlu0 }
 0x11b   : > { %281 = vst.msk [vmem:[%s638_s19 + $0xf0] sm:$0xff] %vm250_vm0, %v248_v32 }
 0x11e   : > { %v249_v33 = vpop.trf.xlu0 }
 0x11f   : > { %282 = vst.msk [vmem:[%s638_s19 + $0xf8] sm:$0xff] %vm250_vm0, %v249_v33 }
 0x120 PF: > { %s14_s11 = sadd.s32 1, %s543_s11   ;;  %s727_s6 = smov %s527_s7 }
 0x121   : > { %p11_p7 = scmp.ge.s32.totalorder %s14_s11, 4   ;;  %s728_s7 = smov %s531_s8 }
 0x122   : > { %s729_s8 = smov %s605_s18  ;;  %s730_s9 = smov %s539_s10 }
 0x123   : > { %s731_s10 = smov %s733_s13  ;;  %13 = sbr.rel (!%p11_p7) target bundleno = 4 (0x4), region = 64 }
 0x128   :  { %319 = vsyncpa [#allocation3], 1 }
 0x129   :  { %321 = vsyncpa [#allocation3 + $0x1], 1 }

</bundles_post_ra>
